<compile_context>
chip_gen: v7x
topology: tpu7x:2x2x1
jax: 0.10.0
libtpu: 0.0.40
codegen_flags: <defaults>
</compile_context>

<pallas_src>
import functools

import jax
import jax.numpy as jnp
from jax.experimental import pallas as pl
from jax.experimental.pallas import tpu as pltpu

LANE = 128


def _round_up(x, m):
    return ((x + m - 1) // m) * m


def _critic_kernel(z_ref, w_ref, out_ref, *, r_dim, n_lanes):
    """Fused twin-Q MLP.
       z_ref  : (1, R)        zero-padded concat(flatten(x), flatten(x1))
       w_ref  : (4, R+8, N)   packed weights; row R of each slice is the bias
       out_ref: (1, N)        col 0 = Q1, col 1 = Q2, remaining lanes exact 0
    """
    # Layer 1 (fused heads: columns = [W1 | W11]). z's padded rows are exact
    # zeros, so contracting over all R rows is exact.
    w0 = w_ref[0]                                    # (R+8, N)
    h = jnp.maximum(
        jnp.dot(z_ref[...], w0[0:r_dim, :],
                preferred_element_type=jnp.float32)
        + w0[r_dim:r_dim + 1, :],                    # folded bias row
        0.0)

    # Layers 2-4: block-diagonal fused weights. h's lanes >= 2H are exact
    # zeros, so contracting over all N rows is exact; layer 4's padded columns
    # and padded bias lanes are zero, so relu(0 + 0) keeps extra output lanes
    # at exactly 0.
    for layer in (1, 2, 3):
        wl = w_ref[layer]                            # (R+8, N)
        h = jnp.maximum(
            jnp.dot(h, wl[0:n_lanes, :],
                    preferred_element_type=jnp.float32)
            + wl[r_dim:r_dim + 1, :],
            0.0)

    out_ref[...] = h                                 # single unmasked lane-dense store


def pack_critic_params(params, num_input_feature, action_size, hidden_dim):
    """Pack the 16 per-layer tensors into ONE (4, R+8, N) f32 buffer.

    N = lane-padded output width  = round_up(max(2H, 128), 128)
    R = contraction row count     = max(round_up(F+A, 8), N)     (8-aligned)
    Rows 0:R of each slice hold the weights, row R holds the bias, rows
    R+1:R+8 are zero padding (keeps the bias block 8-aligned).

      slice 0: rows 0:F+A = [W1 | W11]
      slice 1: block-diag(W2, W22)
      slice 2: block-diag(W3, W33)
      slice 3: col 0 = [w4; 0], col 1 = [0; w44], rest 0
    Returns (w_packed, R, N).
    """
    h = hidden_dim
    h2 = 2 * h
    in_dim = num_input_feature + action_size
    n = _round_up(max(h2, LANE), LANE)
    r = max(_round_up(in_dim, 8), n)

    w = jnp.zeros((4, r + 8, n), jnp.float32)

    # Weights.
    w = w.at[0, :in_dim, :h].set(params["w1"])
    w = w.at[0, :in_dim, h:h2].set(params["w11"])
    w = w.at[1, :h, :h].set(params["w2"])
    w = w.at[1, h:h2, h:h2].set(params["w22"])
    w = w.at[2, :h, :h].set(params["w3"])
    w = w.at[2, h:h2, h:h2].set(params["w33"])
    w = w.at[3, :h, 0:1].set(params["w4"])
    w = w.at[3, h:h2, 1:2].set(params["w44"])

    # Biases folded into row R of each slice.
    w = w.at[0, r, :h].set(params["b1"].reshape(-1))
    w = w.at[0, r, h:h2].set(params["b11"].reshape(-1))
    w = w.at[1, r, :h].set(params["b2"].reshape(-1))
    w = w.at[1, r, h:h2].set(params["b22"].reshape(-1))
    w = w.at[2, r, :h].set(params["b3"].reshape(-1))
    w = w.at[2, r, h:h2].set(params["b33"].reshape(-1))
    w = w.at[3, r, 0].set(params["b4"].reshape(-1)[0])
    w = w.at[3, r, 1].set(params["b44"].reshape(-1)[0])
    return w, r, n


def critic_forward(x, x1, w_packed, *, r_dim, n_lanes):
    """Returns (y, y1), each of shape (1,), matching the PyTorch module."""
    # Wrapper-side concat + zero-pad to the kernel's contraction width R.
    z = jnp.concatenate(
        [x.reshape(-1), x1.reshape(-1)], axis=-1).astype(jnp.float32)
    z = jnp.pad(z, (0, r_dim - z.shape[0]))[None, :]   # (1, R)

    vmem = pl.BlockSpec(memory_space=pltpu.MemorySpace.VMEM)
    kernel = functools.partial(_critic_kernel, r_dim=r_dim, n_lanes=n_lanes)

    out = pl.pallas_call(
        kernel,
        out_shape=jax.ShapeDtypeStruct((1, n_lanes), jnp.float32),
        in_specs=[vmem, vmem],
        out_specs=vmem,
    )(z, w_packed)

    # col 0 = Q1, col 1 = Q2
    return out[0, 0:1], out[0, 1:2]


def init_critic_params(key, num_input_feature, hidden_dim, action_size):
    """Deterministic synthetic init (weights (in, out); biases (1, out))."""
    in_dim = num_input_feature + action_size
    dims = [
        ("w1", (in_dim, hidden_dim)), ("b1", (1, hidden_dim)),
        ("w2", (hidden_dim, hidden_dim)), ("b2", (1, hidden_dim)),
        ("w3", (hidden_dim, hidden_dim)), ("b3", (1, hidden_dim)),
        ("w4", (hidden_dim, 1)), ("b4", (1, 1)),
        ("w11", (in_dim, hidden_dim)), ("b11", (1, hidden_dim)),
        ("w22", (hidden_dim, hidden_dim)), ("b22", (1, hidden_dim)),
        ("w33", (hidden_dim, hidden_dim)), ("b33", (1, hidden_dim)),
        ("w44", (hidden_dim, 1)), ("b44", (1, 1)),
    ]
    params = {}
    keys = jax.random.split(key, len(dims))
    for (name, shape), k in zip(dims, keys):
        fan_in = shape[0] if name.startswith("w") else shape[1]
        scale = 1.0 / jnp.sqrt(jnp.float32(fan_in))
        params[name] = (jax.random.uniform(k, shape, jnp.float32, -1.0, 1.0)
                        * scale)
    return params


def _reference_forward(x, x1, params):
    """Pure-JAX reference on the ORIGINAL (unpacked) params."""
    z = jnp.concatenate([x.reshape(-1), x1.reshape(-1)], axis=-1)[None, :]

    def mlp(prefixes):
        h = z
        for p in prefixes:
            h = jnp.maximum(h @ params["w" + p] + params["b" + p], 0.0)
        return h.reshape(-1)

    return mlp(["1", "2", "3", "4"]), mlp(["11", "22", "33", "44"])


if __name__ == "__main__":
    # Small shapes: num_input_feature = 32 (x is (4, 8)), action_dim = (8,),
    # hidden_dim = 32.
    NUM_INPUT_FEATURE = 32
    HIDDEN_DIM = 32
    ACTION_SIZE = 8

    key = jax.random.PRNGKey(0)
    kx, kx1, kp = jax.random.split(key, 3)

    x = jax.random.normal(kx, (4, 8), jnp.float32)        # flattens to (32,)
    x1 = jax.random.normal(kx1, (ACTION_SIZE,), jnp.float32)
    params = init_critic_params(kp, NUM_INPUT_FEATURE, HIDDEN_DIM, ACTION_SIZE)

    # One-time packing (would live at module-init time in a real pipeline).
    w_packed, r_dim, n_lanes = pack_critic_params(
        params, NUM_INPUT_FEATURE, ACTION_SIZE, HIDDEN_DIM)

    y, y1 = critic_forward(x, x1, w_packed, r_dim=r_dim, n_lanes=n_lanes)
    y, y1 = jax.block_until_ready((y, y1))

    y_ref, y1_ref = _reference_forward(x, x1, params)
    assert y.shape == (1,) and y1.shape == (1,)
    assert jnp.allclose(y, y_ref, atol=1e-4, rtol=1e-4)
    assert jnp.allclose(y1, y1_ref, atol=1e-4, rtol=1e-4)

    print("KERNEL_OK")
</pallas_src>

<mosaic_0001>
module attributes {stable_mosaic.version = 11 : i64} {
  func.func @_critic_kernel(%arg0: memref<1x128xf32, #tpu.memory_space<vmem>>, %arg1: memref<4x136x128xf32, #tpu.memory_space<vmem>>, %arg2: memref<1x128xf32, #tpu.memory_space<vmem>>) attributes {dimension_semantics = [], scalar_prefetch = 0 : i64, scratch_operands = 0 : i64, tpu.core_type = #tpu.core_type<tc>} {
    %c0 = arith.constant 0 : index
    %c0_0 = arith.constant 0 : index
    %c0_1 = arith.constant 0 : index
    %0 = vector.load %arg1[%c0, %c0_0, %c0_1] : memref<4x136x128xf32, #tpu.memory_space<vmem>>, vector<1x136x128xf32>
    %1 = vector.shape_cast %0 : vector<1x136x128xf32> to vector<136x128xf32>
    %c0_2 = arith.constant 0 : index
    %c0_3 = arith.constant 0 : index
    %2 = vector.load %arg0[%c0_2, %c0_3] : memref<1x128xf32, #tpu.memory_space<vmem>>, vector<1x128xf32>
    %3 = vector.extract_strided_slice %1 {offsets = [0, 0], sizes = [128, 128], strides = [1, 1]} : vector<136x128xf32> to vector<128x128xf32>
    %cst = arith.constant dense<0.000000e+00> : vector<1x128xf32>
    %4 = tpu.matmul %2, %3, %cst {dimension_numbers = #tpu.dot_dimension_numbers<[1], [0], [0], [1], [0, 0, 1, 1], [], []>} : vector<1x128xf32>, vector<128x128xf32>, vector<1x128xf32> -> vector<1x128xf32>
    %5 = vector.extract_strided_slice %1 {offsets = [128, 0], sizes = [1, 128], strides = [1, 1]} : vector<136x128xf32> to vector<1x128xf32>
    %6 = arith.addf %4, %5 : vector<1x128xf32>
    %cst_4 = arith.constant 0.000000e+00 : f32
    %7 = vector.broadcast %cst_4 : f32 to vector<1x128xf32>
    %8 = arith.maximumf %6, %7 : vector<1x128xf32>
    %c1 = arith.constant 1 : index
    %c0_5 = arith.constant 0 : index
    %c0_6 = arith.constant 0 : index
    %9 = vector.load %arg1[%c1, %c0_5, %c0_6] : memref<4x136x128xf32, #tpu.memory_space<vmem>>, vector<1x136x128xf32>
    %10 = vector.shape_cast %9 : vector<1x136x128xf32> to vector<136x128xf32>
    %11 = vector.extract_strided_slice %10 {offsets = [0, 0], sizes = [128, 128], strides = [1, 1]} : vector<136x128xf32> to vector<128x128xf32>
    %cst_7 = arith.constant dense<0.000000e+00> : vector<1x128xf32>
    %12 = tpu.matmul %8, %11, %cst_7 {dimension_numbers = #tpu.dot_dimension_numbers<[1], [0], [0], [1], [0, 0, 1, 1], [], []>} : vector<1x128xf32>, vector<128x128xf32>, vector<1x128xf32> -> vector<1x128xf32>
    %13 = vector.extract_strided_slice %10 {offsets = [128, 0], sizes = [1, 128], strides = [1, 1]} : vector<136x128xf32> to vector<1x128xf32>
    %14 = arith.addf %12, %13 : vector<1x128xf32>
    %cst_8 = arith.constant 0.000000e+00 : f32
    %15 = vector.broadcast %cst_8 : f32 to vector<1x128xf32>
    %16 = arith.maximumf %14, %15 : vector<1x128xf32>
    %c2 = arith.constant 2 : index
    %c0_9 = arith.constant 0 : index
    %c0_10 = arith.constant 0 : index
    %17 = vector.load %arg1[%c2, %c0_9, %c0_10] : memref<4x136x128xf32, #tpu.memory_space<vmem>>, vector<1x136x128xf32>
    %18 = vector.shape_cast %17 : vector<1x136x128xf32> to vector<136x128xf32>
    %19 = vector.extract_strided_slice %18 {offsets = [0, 0], sizes = [128, 128], strides = [1, 1]} : vector<136x128xf32> to vector<128x128xf32>
    %cst_11 = arith.constant dense<0.000000e+00> : vector<1x128xf32>
    %20 = tpu.matmul %16, %19, %cst_11 {dimension_numbers = #tpu.dot_dimension_numbers<[1], [0], [0], [1], [0, 0, 1, 1], [], []>} : vector<1x128xf32>, vector<128x128xf32>, vector<1x128xf32> -> vector<1x128xf32>
    %21 = vector.extract_strided_slice %18 {offsets = [128, 0], sizes = [1, 128], strides = [1, 1]} : vector<136x128xf32> to vector<1x128xf32>
    %22 = arith.addf %20, %21 : vector<1x128xf32>
    %cst_12 = arith.constant 0.000000e+00 : f32
    %23 = vector.broadcast %cst_12 : f32 to vector<1x128xf32>
    %24 = arith.maximumf %22, %23 : vector<1x128xf32>
    %c3 = arith.constant 3 : index
    %c0_13 = arith.constant 0 : index
    %c0_14 = arith.constant 0 : index
    %25 = vector.load %arg1[%c3, %c0_13, %c0_14] : memref<4x136x128xf32, #tpu.memory_space<vmem>>, vector<1x136x128xf32>
    %26 = vector.shape_cast %25 : vector<1x136x128xf32> to vector<136x128xf32>
    %27 = vector.extract_strided_slice %26 {offsets = [0, 0], sizes = [128, 128], strides = [1, 1]} : vector<136x128xf32> to vector<128x128xf32>
    %cst_15 = arith.constant dense<0.000000e+00> : vector<1x128xf32>
    %28 = tpu.matmul %24, %27, %cst_15 {dimension_numbers = #tpu.dot_dimension_numbers<[1], [0], [0], [1], [0, 0, 1, 1], [], []>} : vector<1x128xf32>, vector<128x128xf32>, vector<1x128xf32> -> vector<1x128xf32>
    %29 = vector.extract_strided_slice %26 {offsets = [128, 0], sizes = [1, 128], strides = [1, 1]} : vector<136x128xf32> to vector<1x128xf32>
    %30 = arith.addf %28, %29 : vector<1x128xf32>
    %cst_16 = arith.constant 0.000000e+00 : f32
    %31 = vector.broadcast %cst_16 : f32 to vector<1x128xf32>
    %32 = arith.maximumf %30, %31 : vector<1x128xf32>
    %c0_17 = arith.constant 0 : index
    %c0_18 = arith.constant 0 : index
    %33 = vector.load %arg2[%c0_17, %c0_18] : memref<1x128xf32, #tpu.memory_space<vmem>>, vector<1x128xf32>
    tpu.vector_store %arg2[%c0_17, %c0_18], %32 {strides = array<i32>} : memref<1x128xf32, #tpu.memory_space<vmem>>, vector<1x128xf32>,
    return
  }
}

</mosaic_0001>

<bundles_post_ra>
// kernel: tpu_custom_call.1
= control target key start
LH: loop header
LB: loop body
LE: loop exit
PB: predicated region body
PF: predicated region fallthrough
CT: control target
= control target key end

     0   :  { %7 = vsyncpa [#allocation3], 0  ;;  %s901_s0 = inlined_call_operand.hbm [shape: f32[1,128], index: 0, kind: input, shape index: {}]   ;;  %s902_s1 = inlined_call_operand.hbm [shape: f32[4,136,128], index: 1, kind: input, shape index: {}]   ;;  %s903_s2 = inlined_call_operand.hbm [shape: f32[1,128], index: 2, kind: output, shape index: {}]  }
   0x1   :  { %8 = vsyncpa [#allocation6], 0 }
   0x2   :  { %9 = vsyncpa [#allocation4], 0  ;;  %s795_s9 = smov [#allocation2]   ;;  %s796_s11 = smov [#allocation5]  }
   0x3   :  { %s16_s10 = sshll.u32 %s795_s9, 4  ;;  %s25_s12 = sshll.u32 %s796_s11, 4  ;;  %s17_s10 = int_to_ptr.vmem [resolvable:$true] %s16_s10  ;;  %s818_s12 = int_to_ptr.vmem [resolvable:$true] %s25_s12 }
   0x4   :  { %s723_s15 = scalar_lea.hbm %s901_s0, 16 }
   0x5   :  { %p724_p0 = scmp.ne.s32.totalorder %s901_s0, %s723_s15  ;;  %p727_p1 = scmp.lt.u32.totalorder %s723_s15, %s901_s0 }
   0x7   :  { %p729_p2 = pnand %p727_p1, %p724_p0 }
   0x9   :  { %732 = shalt.err (!%p729_p2)
}
   0xa   :  { %s733_s20 = scalar_lea.vmem %s17_s10, 16  ;;  %s737_s21 = scalar_lea.vmem %s17_s10, 32 }
   0xb   :  { %p734_p3 = scmp.ne.s32.totalorder %s17_s10, %s733_s20  ;;  %p738_p4 = scmp.lt.s32.totalorder %s17_s10, %s17_s10 }
   0xc   :  { %p739_p5 = scmp.lt.s32.totalorder %s737_s21, %s733_s20 }
   0xe   :  { %p740_p6 = por %p739_p5, %p738_p4 }
  0x10   :  { %p741_p7 = pnand %p740_p6, %p734_p3 }
  0x12   :  { %744 = shalt.err (!%p741_p7)
}
  0x13   :  { %19 = dma.hbm_to_vmem [thread:$0]  %s901_s0, 16, %s17_s10, [#allocation3]  }
  0x14   :  { %s745_s26 = scalar_lea.hbm %s902_s1, 8704 }
  0x15   :  { %p746_p8 = scmp.ne.s32.totalorder %s902_s1, %s745_s26  ;;  %p749_p9 = scmp.lt.u32.totalorder %s745_s26, %s902_s1 }
  0x17   :  { %p751_p10 = pnand %p749_p9, %p746_p8 }
  0x19   :  { %754 = shalt.err (!%p751_p10)
}
  0x1a   :  { %s755_s3 = scalar_lea.vmem %s818_s12, 8704  ;;  %p760_p12 = scmp.lt.s32.totalorder %s818_s12, %s818_s12 }
  0x1b   :  { %p756_p11 = scmp.ne.s32.totalorder %s818_s12, %s755_s3  ;;  %p761_p13 = scmp.lt.s32.totalorder %s755_s3, %s755_s3 }
  0x1d   :  { %p762_p0 = por %p761_p13, %p760_p12 }
  0x1f   :  { %p763_p1 = pnand %p762_p0, %p756_p11 }
  0x21   :  { %766 = shalt.err (!%p763_p1)
}
  0x22   :  { %s797_s0 = smov 128   ;;  %s798_s4 = smov 8  }
  0x23   :  { %31 = dma.hbm_to_vmem [thread:$0]  %s902_s1, 8704, %s818_s12, [#allocation6], %s797_s0, %s797_s0, %s798_s4  }
  0x24   :  { %789 = dma.done.wait [#allocation3], 16  }
  0x25   :  { %790 = vsyncadd [#allocation3], 4294967280 }
  0x26   :  { %791 = dma.done.wait [#allocation6], 8704  }
  0x27   :  { %792 = vsyncadd [#allocation6], 4294958592  ;;  %v799_v0 = vmov 0.0|0.0   ;;  %vm800_vm0 = vmmov 0   ;;  %v801_v1 = vmov 0.0   ;;  %v38_v2 = vld [vmem:[#allocation5] sm:$0xff] }
  0x28   :  { %619 = vmatprep.subr.bf16.mxu0 %v799_v0  ;;  %511 = vmatprep.mubr.msk.f32.mxu0 %vm800_vm0, %v801_v1  ;;  %v39_v3 = vld [vmem:[#allocation5 + $0x8] sm:$0xff]  ;;  %v40_v4 = vld [vmem:[#allocation5 + $0x10] sm:$0xff]  ;;  %v41_v6 = vld [vmem:[#allocation5 + $0x18] sm:$0xff]  ;;  %s802_s1 = smov [#allocation7]  }
  0x29   :  { %643 = vmatprep.subr.bf16.mxu1 %v799_v0  ;;  %546 = vmatprep.mubr.msk.f32.mxu1 %vm800_vm0, %v801_v1  ;;  %v620_v5 = vpack.c.bf16 %v39_v3, %v38_v2  ;;  %v623_v7 = vpack.c.bf16 %v41_v6, %v40_v4  ;;  %v42_v8 = vld [vmem:[#allocation5 + $0x20] sm:$0xff]  ;;  %v43_v9 = vld [vmem:[#allocation5 + $0x28] sm:$0xff]  ;;  %v129_v11 = vld [vmem:[#allocation5 + $0x90] sm:$0xff]  ;;  %s401_s7 = sshll.u32 %s802_s1, 4  ;;  %s402_s7 = int_to_ptr.vmem [resolvable:$true] %s401_s7 }
  0x2a   :  { %v128_v10 = vld [vmem:[#allocation5 + $0x88] sm:$0xff]  ;;  %v130_v12 = vld [vmem:[#allocation5 + $0x98] sm:$0xff]  ;;  %v131_v13 = vld [vmem:[#allocation5 + $0xa0] sm:$0xff]  ;;  %v626_v14 = vpack.c.bf16 %v43_v9, %v42_v8  ;;  %s767_s8 = scalar_lea.vmem %s402_s7, 16  ;;  %s771_s9 = scalar_lea.vmem %s402_s7, 32 }
  0x2b   :  { %621 = vmatpush3.bf16.msra.mxu0 %v620_v5  ;;  %v644_v15 = vpack.c.bf16 %v129_v11, %v128_v10  ;;  %v44_v16 = vld [vmem:[#allocation5 + $0x30] sm:$0xff]  ;;  %v45_v17 = vld [vmem:[#allocation5 + $0x38] sm:$0xff]  ;;  %v647_v18 = vpack.c.bf16 %v131_v13, %v130_v12  ;;  %v132_v19 = vld [vmem:[#allocation5 + $0xa8] sm:$0xff]  ;;  %p768_p2 = scmp.ne.s32.totalorder %s402_s7, %s767_s8  ;;  %p772_p3 = scmp.lt.s32.totalorder %s402_s7, %s402_s7 }
  0x2c   :  { %622 = vmatprep.subr.bf16.mxu0 %v799_v0  ;;  %v133_v20 = vld [vmem:[#allocation5 + $0xb0] sm:$0xff]  ;;  %v629_v21 = vpack.c.bf16 %v45_v17, %v44_v16  ;;  %v46_v22 = vld [vmem:[#allocation5 + $0x40] sm:$0xff]  ;;  %v47_v23 = vld [vmem:[#allocation5 + $0x48] sm:$0xff]  ;;  %p773_p4 = scmp.lt.s32.totalorder %s771_s9, %s767_s8 }
  0x2d   :  { %645 = vmatpush3.bf16.msra.mxu1 %v644_v15  ;;  %v650_v24 = vpack.c.bf16 %v133_v20, %v132_v19  ;;  %v134_v25 = vld [vmem:[#allocation5 + $0xb8] sm:$0xff]  ;;  %v135_v26 = vld [vmem:[#allocation5 + $0xc0] sm:$0xff]  ;;  %v632_v27 = vpack.c.bf16 %v47_v23, %v46_v22  ;;  %v48_v28 = vld [vmem:[#allocation5 + $0x50] sm:$0xff] }
  0x2e   :  { %646 = vmatprep.subr.bf16.mxu1 %v799_v0  ;;  %v49_v29 = vld [vmem:[#allocation5 + $0x58] sm:$0xff]  ;;  %v653_v30 = vpack.c.bf16 %v135_v26, %v134_v25  ;;  %v136_v31 = vld [vmem:[#allocation5 + $0xc8] sm:$0xff]  ;;  %v137_v32 = vld [vmem:[#allocation5 + $0xd0] sm:$0xff]  ;;  %p774_p5 = por %p773_p4, %p772_p3 }
  0x2f   :  { %624 = vmatpush3.bf16.msra.mxu0 %v623_v7  ;;  %v635_v33 = vpack.c.bf16 %v49_v29, %v48_v28  ;;  %v50_v34 = vld [vmem:[#allocation5 + $0x60] sm:$0xff]  ;;  %v51_v35 = vld [vmem:[#allocation5 + $0x68] sm:$0xff]  ;;  %v656_v36 = vpack.c.bf16 %v137_v32, %v136_v31  ;;  %v138_v37 = vld [vmem:[#allocation5 + $0xd8] sm:$0xff] }
  0x30   :  { %625 = vmatprep.subr.bf16.mxu0 %v799_v0  ;;  %v139_v38 = vld [vmem:[#allocation5 + $0xe0] sm:$0xff]  ;;  %v638_v39 = vpack.c.bf16 %v51_v35, %v50_v34  ;;  %v52_v40 = vld [vmem:[#allocation5 + $0x70] sm:$0xff]  ;;  %v53_v41 = vld [vmem:[#allocation5 + $0x78] sm:$0xff]  ;;  %p775_p6 = pnand %p774_p5, %p768_p2 }
  0x31   :  { %648 = vmatpush3.bf16.msra.mxu1 %v647_v18  ;;  %v659_v42 = vpack.c.bf16 %v139_v38, %v138_v37  ;;  %v140_v43 = vld [vmem:[#allocation5 + $0xe8] sm:$0xff]  ;;  %v141_v44 = vld [vmem:[#allocation5 + $0xf0] sm:$0xff]  ;;  %v641_v45 = vpack.c.bf16 %v53_v41, %v52_v40  ;;  %v55_v47 = vld [vmem:[#allocation2] sm:$0x1] }
  0x32   :  { %649 = vmatprep.subr.bf16.mxu1 %v799_v0  ;;  %v662_v46 = vpack.c.bf16 %v141_v44, %v140_v43  ;;  %v142_v48 = vld [vmem:[#allocation5 + $0xf8] sm:$0xff]  ;;  %v143_v49 = vld [vmem:[#allocation5 + $0x100] sm:$0xff]  ;;  %v217_v51 = vld [vmem:[#allocation5 + $0x110] sm:$0xff] }
  0x33   :  { %627 = vmatpush3.bf16.msra.mxu0 %v626_v14  ;;  %v665_v50 = vpack.c.bf16 %v143_v49, %v142_v48  ;;  %v218_v52 = vld [vmem:[#allocation5 + $0x118] sm:$0xff]  ;;  %v219_v53 = vld [vmem:[#allocation5 + $0x120] sm:$0xff]  ;;  %v220_v55 = vld [vmem:[#allocation5 + $0x128] sm:$0xff] }
  0x34   :  { %628 = vmatprep.subr.bf16.mxu0 %v799_v0  ;;  %v668_v54 = vpack.c.bf16 %v218_v52, %v217_v51  ;;  %v671_v56 = vpack.c.bf16 %v220_v55, %v219_v53  ;;  %v221_v57 = vld [vmem:[#allocation5 + $0x130] sm:$0xff]  ;;  %v222_v58 = vld [vmem:[#allocation5 + $0x138] sm:$0xff]  ;;  %v223_v60 = vld [vmem:[#allocation5 + $0x140] sm:$0xff] }
  0x35   :  { %651 = vmatpush3.bf16.msra.mxu1 %v650_v24  ;;  %v674_v59 = vpack.c.bf16 %v222_v58, %v221_v57  ;;  %v224_v61 = vld [vmem:[#allocation5 + $0x148] sm:$0xff]  ;;  %v225_v63 = vld [vmem:[#allocation5 + $0x150] sm:$0xff]  ;;  %v226_v2 = vld [vmem:[#allocation5 + $0x158] sm:$0xff] }
  0x36   :  { %652 = vmatprep.subr.bf16.mxu1 %v799_v0  ;;  %v677_v62 = vpack.c.bf16 %v224_v61, %v223_v60  ;;  %v680_v3 = vpack.c.bf16 %v226_v2, %v225_v63  ;;  %v227_v4 = vld [vmem:[#allocation5 + $0x160] sm:$0xff]  ;;  %v228_v5 = vld [vmem:[#allocation5 + $0x168] sm:$0xff]  ;;  %v229_v7 = vld [vmem:[#allocation5 + $0x170] sm:$0xff] }
  0x37   :  { %630 = vmatpush3.bf16.msra.mxu0 %v629_v21  ;;  %v683_v6 = vpack.c.bf16 %v228_v5, %v227_v4  ;;  %v230_v8 = vld [vmem:[#allocation5 + $0x178] sm:$0xff]  ;;  %v54_v10 = vld [vmem:[#allocation5 + $0x80] sm:$0xff]  ;;  %v232_v16 = vld [vmem:[#allocation5 + $0x188] sm:$0xff] }
  0x38   :  { %631 = vmatprep.subr.bf16.mxu0 %v799_v0  ;;  %v686_v9 = vpack.c.bf16 %v230_v8, %v229_v7  ;;  %v231_v15 = vld [vmem:[#allocation5 + $0x180] sm:$0xff]  ;;  %v306_v18 = vld [vmem:[#allocation5 + $0x198] sm:$0xff]  ;;  %v308_v20 = vld [vmem:[#allocation5 + $0x1a8] sm:$0xff] }
  0x39   :  { %654 = vmatpush3.bf16.msra.mxu1 %v653_v30  ;;  %v689_v17 = vpack.c.bf16 %v232_v16, %v231_v15  ;;  %v307_v19 = vld [vmem:[#allocation5 + $0x1a0] sm:$0xff]  ;;  %v309_v22 = vld [vmem:[#allocation5 + $0x1b0] sm:$0xff]  ;;  %v310_v24 = vld [vmem:[#allocation5 + $0x1b8] sm:$0xff] }
  0x3a   :  { %655 = vmatprep.subr.bf16.mxu1 %v799_v0  ;;  %v692_v21 = vpack.c.bf16 %v307_v19, %v306_v18  ;;  %v695_v23 = vpack.c.bf16 %v309_v22, %v308_v20  ;;  %v311_v25 = vld [vmem:[#allocation5 + $0x1c0] sm:$0xff]  ;;  %v314_v29 = vld [vmem:[#allocation5 + $0x1d8] sm:$0xff]  ;;  %v316_v32 = vld [vmem:[#allocation5 + $0x1e8] sm:$0xff] }
  0x3b   :  { %633 = vmatpush3.bf16.msra.mxu0 %v632_v27  ;;  %v698_v26 = vpack.c.bf16 %v311_v25, %v310_v24  ;;  %v313_v27 = vld [vmem:[#allocation5 + $0x1d0] sm:$0xff]  ;;  %v315_v30 = vld [vmem:[#allocation5 + $0x1e0] sm:$0xff]  ;;  %v318_v35 = vld [vmem:[#allocation5 + $0x1f8] sm:$0xff] }
  0x3c   :  { %634 = vmatprep.subr.bf16.mxu0 %v799_v0  ;;  %v704_v31 = vpack.c.bf16 %v315_v30, %v314_v29  ;;  %v144_v38 = vld [vmem:[#allocation5 + $0x108] sm:$0xff]  ;;  %v321_v44 = vld [vmem:[#allocation5 + $0x210] sm:$0xff]  ;;  %v322_v51 = vld [vmem:[#allocation5 + $0x218] sm:$0xff] }
  0x3d   :  { %657 = vmatpush3.bf16.msra.mxu1 %v656_v36  ;;  %v319_v36 = vld [vmem:[#allocation5 + $0x200] sm:$0xff]  ;;  %v320_v43 = vld [vmem:[#allocation5 + $0x208] sm:$0xff] }
  0x3e   :  { %658 = vmatprep.subr.bf16.mxu1 %v799_v0  ;;  %v710_v37 = vpack.c.bf16 %v319_v36, %v318_v35 }
  0x3f   :  { %636 = vmatpush3.bf16.msra.mxu0 %v635_v33  ;;  %v317_v33 = vld [vmem:[#allocation5 + $0x1f0] sm:$0xff] }
  0x40   :  { %637 = vmatprep.subr.bf16.mxu0 %v799_v0  ;;  %v707_v34 = vpack.c.bf16 %v317_v33, %v316_v32 }
  0x41   :  { %660 = vmatpush3.bf16.msra.mxu1 %v659_v42 }
  0x42   :  { %661 = vmatprep.subr.bf16.mxu1 %v799_v0 }
  0x43   :  { %639 = vmatpush3.bf16.msra.mxu0 %v638_v39 }
  0x44   :  { %640 = vmatprep.subr.bf16.mxu0 %v799_v0 }
  0x45   :  { %663 = vmatpush3.bf16.msra.mxu1 %v662_v46  ;;  %v233_v46 = vld [vmem:[#allocation5 + $0x190] sm:$0xff] }
  0x46   :  { %664 = vmatprep.subr.bf16.mxu1 %v799_v0 }
  0x47   :  { %642 = vmatpush3.bf16.msra.mxu0 %v641_v45  ;;  %v713_v45 = vpack.c.bf16 %v321_v44, %v320_v43 }
  0x48   :  { %667 = vmatprep.subr.bf16.mxu0 %v799_v0 }
  0x49   :  { %666 = vmatpush3.bf16.msra.mxu1 %v665_v50 }
  0x4a   :  { %512 = vmatmul.mubr.f32.vlgmr.msra.gmra.mrb[0].mxu0 %v55_v47  ;;  %691 = vmatprep.subr.bf16.mxu1 %v799_v0 }
  0x4b   :  { %581 = vmatprep.mubr.msk.f32.mxu0 %vm800_vm0, %v801_v1  ;;  %669 = vmatpush3.bf16.msra.mxu0 %v668_v54 }
  0x4c   :  { %670 = vmatprep.subr.bf16.mxu0 %v799_v0 }
  0x4f   :  { %672 = vmatpush3.bf16.msra.mxu0 %v671_v56 }
  0x50   :  { %673 = vmatprep.subr.bf16.mxu0 %v799_v0 }
  0x53   :  { %675 = vmatpush3.bf16.msra.mxu0 %v674_v59 }
  0x54   :  { %676 = vmatprep.subr.bf16.mxu0 %v799_v0 }
  0x57   :  { %678 = vmatpush3.bf16.msra.mxu0 %v677_v62 }
  0x58   :  { %679 = vmatprep.subr.bf16.mxu0 %v799_v0 }
  0x5b   :  { %681 = vmatpush3.bf16.msra.mxu0 %v680_v3 }
  0x5c   :  { %682 = vmatprep.subr.bf16.mxu0 %v799_v0 }
  0x5f   :  { %684 = vmatpush3.bf16.msra.mxu0 %v683_v6 }
  0x60   :  { %685 = vmatprep.subr.bf16.mxu0 %v799_v0 }
  0x63   :  { %687 = vmatpush3.bf16.msra.mxu0 %v686_v9 }
  0x64   :  { %688 = vmatprep.subr.bf16.mxu0 %v799_v0 }
  0x67   :  { %690 = vmatpush3.bf16.msra.mxu0 %v689_v17 }
 0x11d   :  { %v122_v11 = vpop.f32.mrb[0].mxu0 }
 0x11e   :  { %v123_v12 = vadd.f32 %v122_v11, %v54_v10  ;;  %v513_v13 = vpop.f32.mrb[1].mxu0 }
 0x120   :  { %v126_v14 = vmax.f32 %v123_v12, 0.0 }
 0x122   :  { %547 = vmatmul.mubr.f32.vlgmr.msra.gmra.mrb[0].mxu1 %v126_v14 }
 0x123   :  { %616 = vmatprep.mubr.msk.f32.mxu1 %vm800_vm0, %v801_v1  ;;  %693 = vmatpush3.bf16.msra.mxu1 %v692_v21  ;;  %v312_v1 = vld [vmem:[#allocation5 + $0x1c8] sm:$0xff] }
 0x124   :  { %694 = vmatprep.subr.bf16.mxu1 %v799_v0  ;;  %v701_v28 = vpack.c.bf16 %v313_v27, %v312_v1 }
 0x127   :  { %696 = vmatpush3.bf16.msra.mxu1 %v695_v23 }
 0x128   :  { %697 = vmatprep.subr.bf16.mxu1 %v799_v0 }
 0x12b   :  { %699 = vmatpush3.bf16.msra.mxu1 %v698_v26 }
 0x12c   :  { %700 = vmatprep.subr.bf16.mxu1 %v799_v0 }
 0x12f   :  { %702 = vmatpush3.bf16.msra.mxu1 %v701_v28 }
 0x130   :  { %703 = vmatprep.subr.bf16.mxu1 %v799_v0 }
 0x133   :  { %705 = vmatpush3.bf16.msra.mxu1 %v704_v31 }
 0x134   :  { %706 = vmatprep.subr.bf16.mxu1 %v799_v0 }
 0x137   :  { %708 = vmatpush3.bf16.msra.mxu1 %v707_v34 }
 0x138   :  { %709 = vmatprep.subr.bf16.mxu1 %v799_v0 }
 0x13b   :  { %711 = vmatpush3.bf16.msra.mxu1 %v710_v37 }
 0x13c   :  { %712 = vmatprep.subr.bf16.mxu1 %v799_v0 }
 0x13f   :  { %714 = vmatpush3.bf16.msra.mxu1 %v713_v45 }
 0x1f5   :  { %v211_v39 = vpop.f32.mrb[0].mxu1 }
 0x1f6   :  { %v212_v40 = vadd.f32 %v211_v39, %v144_v38  ;;  %v548_v41 = vpop.f32.mrb[1].mxu1 }
 0x1f8   :  { %v215_v42 = vmax.f32 %v212_v40, 0.0 }
 0x1fa   :  { %582 = vmatmul.mubr.f32.vlgmr.msra.gmra.mrb[2].mxu0 %v215_v42 }
 0x2cd   :  { %v300_v47 = vpop.f32.mrb[2].mxu0 }
 0x2ce   :  { %v301_v48 = vadd.f32 %v300_v47, %v233_v46  ;;  %v583_v49 = vpop.f32.mrb[3].mxu0 }
 0x2d0   :  { %v304_v50 = vmax.f32 %v301_v48, 0.0 }
 0x2d2   :  { %617 = vmatmul.mubr.f32.vlgmr.msra.gmra.mrb[2].mxu1 %v304_v50 }
 0x3a5   :  { %v389_v52 = vpop.f32.mrb[2].mxu1 }
 0x3a6   :  { %v390_v0 = vadd.f32 %v389_v52, %v322_v51  ;;  %v618_v53 = vpop.f32.mrb[3].mxu1 }
 0x3a8   :  { %v393_v54 = vmax.f32 %v390_v0, 0.0 }
 0x3aa   :  { %394 = vst [vmem:[#allocation7] sm:$0x1] %v393_v54 }
 0x3ab   :  { %778 = shalt.err (!%p775_p6)
}
 0x3ac   :  { %s779_s12 = scalar_lea.hbm %s903_s2, 16 }
 0x3ad   :  { %p780_p7 = scmp.ne.s32.totalorder %s903_s2, %s779_s12  ;;  %p783_p8 = scmp.lt.u32.totalorder %s779_s12, %s903_s2 }
 0x3af   :  { %p785_p9 = pnand %p783_p8, %p780_p7 }
 0x3b1   :  { %788 = shalt.err (!%p785_p9)
}
 0x3b2   :  { %404 = dma.vmem_to_hbm [thread:$0]  %s402_s7, 16, %s903_s2, [#allocation4]  }
 0x3b3   :  { %793 = dma.done.wait [#allocation4], 16  }
 0x3b4   :  { %794 = vsyncadd [#allocation4], 4294967280 }
 0x3b5   :  { %408 = vsyncpa [#allocation3], 1 }
 0x3b6   :  { %409 = vsyncpa [#allocation6], 1 }
 0x3b7   :  { %410 = vsyncpa [#allocation4], 1 }

</bundles_post_ra>
